<compile_context>
chip_gen: v5e
topology: v5e:2x2
jax: 0.10.0
libtpu: 0.0.40
codegen_flags: <defaults>
</compile_context>

<pallas_src>
import functools

import jax
import jax.numpy as jnp
from jax import lax
from jax.experimental import pallas as pl
from jax.experimental.pallas import tpu as pltpu


def _round_up(x, m):
    return (x + m - 1) // m * m


def _vmem_capacity_bytes():
    """Physical VMEM of the local TPU generation; conservative 64 MiB fallback."""
    try:
        info = pltpu.get_tpu_info()
        for attr in ("vmem_capacity_bytes", "vmem_bytes", "vmem_size_bytes"):
            v = getattr(info, attr, None)
            if v:
                return int(v)
    except Exception:
        pass
    return 64 << 20


def _resident_spec(block_shape, index_map, single_buffer):
    """BlockSpec for a grid-constant operand; single-buffered when supported."""
    if single_buffer:
        return pl.BlockSpec(block_shape, index_map,
                            pipeline_mode=pl.Buffered(buffer_count=1))
    return pl.BlockSpec(block_shape, index_map)


# ---------------------------------------------------------------------------
# Primary path: one lane-dense matmul per batch tile against the folded table.
# ---------------------------------------------------------------------------
def _fold_kernel(x_dim, idx_ref, t_ref, out_ref):
    # idx_ref: [TB, N]   int32 token indices (pipelined per batch block)
    # t_ref:   [NXp, Hp] folded table (row n*X+x = E[x] @ W_n; row N*X = bias)
    # out_ref: [TB, Hp]  output tile (lane-dense, Hp % 128 == 0)
    TB, N = idx_ref.shape
    NXp, _ = t_ref.shape
    bias_col = N * x_dim

    idx = idx_ref[...]
    lane = lax.broadcasted_iota(jnp.int32, (TB, NXp), 1)     # built once per block
    oh_i = (lane == bias_col).astype(jnp.int32)              # bias column == 1
    for n in range(N):                                       # N is small; static unroll
        oh_i = oh_i + (lane == (idx[:, n:n + 1] + n * x_dim)).astype(jnp.int32)
    onehot = oh_i.astype(t_ref.dtype)                        # exact (0/1) in bf16 too

    out_ref[...] = jnp.dot(
        onehot, t_ref[...], preferred_element_type=jnp.float32
    ).astype(out_ref.dtype)


# ---------------------------------------------------------------------------
# Fallback path: per-slot one-hot gather + matmul, slot loop unrolled in-kernel.
# ---------------------------------------------------------------------------
def _slot_kernel(idx_ref, emb_ref, w_ref, b_ref, out_ref):
    # idx_ref: [TB, N] int32; emb_ref: [X, H]; w_ref: [N, H, Hp]; b_ref: [1, Hp]
    # TODO(synk): group slots so K ~ 256 per matmul here (the fold path already
    #             fills the MXU contraction; this path only runs at large x_dim).
    TB, N = idx_ref.shape
    X, _ = emb_ref.shape
    Hp = out_ref.shape[1]

    idx = idx_ref[...]
    emb = emb_ref[...]
    lane = lax.broadcasted_iota(jnp.int32, (TB, X), 1)       # hoisted out of slot loop
    acc = jnp.zeros((TB, Hp), jnp.float32)                   # vreg accumulator
    for n in range(N):                                       # slot axis unrolled in-kernel
        onehot = (lane == idx[:, n:n + 1]).astype(emb.dtype)
        e_n = jnp.dot(onehot, emb, preferred_element_type=jnp.float32)
        acc = acc + jnp.dot(e_n.astype(w_ref.dtype), w_ref[n],
                            preferred_element_type=jnp.float32)
    out_ref[...] = (acc + b_ref[...]).astype(out_ref.dtype)


def discrete_embedding_encoder(idx, emb_table, w, b, *, batch_tile=None,
                               force_path=None, mxu_dtype=None):
    """Forward pass of DiscreteEmbeddingEncoder.

    idx:       [B, x_num] integer indices in [0, x_dim)
    emb_table: [x_dim, H]    (nn.Embedding weight)
    w:         [x_num*H, H]  (nn.Linear weight transposed, i.e. weight.T)
    b:         [H]           (nn.Linear bias)

    Note: out-of-range / negative indices silently contribute a zero embedding
    (PyTorch nn.Embedding would raise); validate indices upstream.
    """
    B, N = idx.shape
    X, H = emb_table.shape
    assert w.shape == (N * H, H) and b.shape == (H,)

    emb_table = emb_table.astype(jnp.float32)
    w = w.astype(jnp.float32)
    b = b.astype(jnp.float32)

    Hp = _round_up(H, 128)                      # lane-dense output / filled MXU N dim

    # Batch tile: multiple of 8 (f32 sublane); at most 256; at least two batch
    # blocks when B allows so the "parallel" axis shards across 2 TCs (v7x).
    if batch_tile is None:
        batch_tile = min(256, _round_up(max(-(-B // 2), 1), 8))
    TB = max(8, _round_up(batch_tile, 8))
    Bp = _round_up(B, TB)

    idx32 = idx.astype(jnp.int32)
    if Bp != B:
        # Pad with index 0 (always in-range); padded rows are sliced off below.
        idx32 = jnp.pad(idx32, ((0, Bp - B), (0, 0)))

    budget = int(_vmem_capacity_bytes() * 0.8)  # headroom for compiler scratch
    f32 = 4
    NX = N * X
    NXp = _round_up(NX + 1, 128)                # +1 bias row, lane-aligned
    op_bytes = 2 if mxu_dtype == jnp.bfloat16 else 4

    # VMEM needs, including the per-step one-hot / iota temporaries.
    fold_need = (2 * NXp * Hp * op_bytes        # folded table (worst case 2 buffers)
                 + 2 * TB * N * 4               # idx tiles
                 + 2 * TB * Hp * f32            # output tiles
                 + 2 * TB * NXp * f32           # one-hot + lane-iota temporaries
                 + (2 << 20))
    slot_need = (2 * X * H * op_bytes + 2 * N * H * Hp * op_bytes
                 + 2 * TB * N * 4 + 2 * TB * Hp * f32
                 + 2 * TB * X * f32 + TB * Hp * f32 + (2 << 20))

    if force_path is None:
        use_fold = fold_need <= budget
    else:
        use_fold = (force_path == "fold")

    grid = (Bp // TB,)

    def _cparams(need):
        return pltpu.CompilerParams(
            dimension_semantics=("parallel",),
            vmem_limit_bytes=int(min(max(need, 32 << 20), budget)),
        )

    if use_fold:
        # Batch-independent fold (exact f32): T[n*X + x, :] = E[x, :] @ W_n.
        w3 = w.reshape(N, H, H)
        t = jnp.einsum("xh,nhk->nxk", emb_table, w3,
                       precision=lax.Precision.HIGHEST).reshape(NX, H)
        t_aug = jnp.zeros((NXp, Hp), jnp.float32)
        t_aug = t_aug.at[:NX, :H].set(t).at[NX, :H].set(b)   # bias row
        if mxu_dtype is not None:
            t_aug = t_aug.astype(mxu_dtype)

        def build(single_buffer):
            return pl.pallas_call(
                functools.partial(_fold_kernel, X),
                out_shape=jax.ShapeDtypeStruct((Bp, Hp), jnp.float32),
                grid=grid,
                in_specs=[
                    pl.BlockSpec((TB, N), lambda i: (i, 0)),               # idx tile
                    _resident_spec((NXp, Hp), lambda i: (0, 0),            # folded table
                                   single_buffer),
                ],
                out_specs=pl.BlockSpec((TB, Hp), lambda i: (i, 0)),
                compiler_params=_cparams(fold_need),
            )

        try:
            out = build(True)(idx32, t_aug)
        except Exception:   # pipeline_mode=pl.Buffered(1) unsupported -> default buffering
            out = build(False)(idx32, t_aug)
        return out[:B, :H]

    # ---- fallback per-slot path (large x_dim) --------------------------------
    w3p = jnp.zeros((N, H, Hp), jnp.float32).at[:, :, :H].set(w.reshape(N, H, H))
    b2p = jnp.zeros((1, Hp), jnp.float32).at[0, :H].set(b)
    emb_in = emb_table
    if mxu_dtype is not None:
        w3p = w3p.astype(mxu_dtype)
        emb_in = emb_in.astype(mxu_dtype)

    def build(single_buffer):
        return pl.pallas_call(
            _slot_kernel,
            out_shape=jax.ShapeDtypeStruct((Bp, Hp), jnp.float32),
            grid=grid,
            in_specs=[
                pl.BlockSpec((TB, N), lambda i: (i, 0)),                   # idx tile
                _resident_spec((X, H), lambda i: (0, 0), single_buffer),   # table
                _resident_spec((N, H, Hp), lambda i: (0, 0, 0),            # W (resident,
                               single_buffer),                             #  not re-streamed)
                _resident_spec((1, Hp), lambda i: (0, 0), single_buffer),  # bias
            ],
            out_specs=pl.BlockSpec((TB, Hp), lambda i: (i, 0)),
            compiler_params=_cparams(slot_need),
        )

    try:
        out = build(True)(idx32, emb_in, w3p, b2p)
    except Exception:
        out = build(False)(idx32, emb_in, w3p, b2p)
    return out[:B, :H]


def _reference(idx, emb_table, w, b):
    emb = jnp.take(emb_table, idx, axis=0)            # [B, N, H]
    feat = emb.reshape(idx.shape[0], -1)              # [B, N*H]
    return feat @ w + b


if __name__ == "__main__":
    # Small shapes consistent with the module.
    x_dim, x_num, hidden_dim = 16, 8, 32
    batch = 2

    key = jax.random.PRNGKey(0)
    k_idx, k_emb, k_w, k_b = jax.random.split(key, 4)

    # Deterministic parameter init (shapes from __init__):
    #   nn.Embedding(x_dim, hidden_dim)         -> [x_dim, hidden_dim]
    #   nn.Linear(hidden_dim*x_num, hidden_dim) -> W^T: [hidden_dim*x_num, hidden_dim], b: [hidden_dim]
    emb_table = jax.random.normal(k_emb, (x_dim, hidden_dim), dtype=jnp.float32)
    fan_in = hidden_dim * x_num
    bound = 1.0 / (fan_in ** 0.5)
    w = jax.random.uniform(k_w, (fan_in, hidden_dim), jnp.float32, -bound, bound)
    b = jax.random.uniform(k_b, (hidden_dim,), jnp.float32, -bound, bound)

    # Example input: integer token indices in [0, x_dim)
    idx = jax.random.randint(k_idx, (batch, x_num), 0, x_dim, dtype=jnp.int32)

    ref = _reference(idx, emb_table, w, b)

    # Primary (folded single-matmul) path.
    out_fold = jax.block_until_ready(
        discrete_embedding_encoder(idx, emb_table, w, b, force_path="fold"))
    # Fallback (per-slot, in-kernel slot loop) path.
    out_slot = jax.block_until_ready(
        discrete_embedding_encoder(idx, emb_table, w, b, force_path="slot"))

    assert out_fold.shape == (batch, hidden_dim)
    assert out_slot.shape == (batch, hidden_dim)
    assert jnp.allclose(out_fold, ref, atol=1e-5, rtol=1e-5), "fold path mismatch"
    assert jnp.allclose(out_slot, ref, atol=1e-5, rtol=1e-5), "slot path mismatch"

    print("KERNEL_OK")
</pallas_src>

<mosaic_0001>
module attributes {stable_mosaic.version = 11 : i64} {
  func.func @_fold_kernel(%arg0: i32, %arg1: memref<8x8xi32, #tpu.memory_space<vmem>>, %arg2: memref<256x128xf32, #tpu.memory_space<vmem>>, %arg3: memref<8x128xf32, #tpu.memory_space<vmem>>) attributes {dimension_semantics = [#tpu.dimension_semantics<parallel>], iteration_bounds = array<i64: 1>, scalar_prefetch = 0 : i64, scratch_operands = 0 : i64, tpu.core_type = #tpu.core_type<tc>, window_params = [{transform_indices = @transform_0, window_bounds = array<i64: 8, 8>}, {pipeline_mode = #tpu.pipeline_mode<synchronous>, transform_indices = @transform_1, window_bounds = array<i64: 256, 128>}, {transform_indices = @transform_2, window_bounds = array<i64: 8, 128>}]} {
    %c0 = arith.constant 0 : index
    %c0_0 = arith.constant 0 : index
    %0 = vector.load %arg1[%c0, %c0_0] : memref<8x8xi32, #tpu.memory_space<vmem>>, vector<8x8xi32>
    %1 = tpu.iota {dimensions = array<i32: 1>} : vector<8x256xi32>
    %c128_i32 = arith.constant 128 : i32
    %2 = vector.broadcast %c128_i32 : i32 to vector<8x256xi32>
    %3 = arith.cmpi eq, %1, %2 : vector<8x256xi32>
    %4 = arith.extui %3 : vector<8x256xi1> to vector<8x256xi32>
    %5 = vector.extract_strided_slice %0 {offsets = [0, 0], sizes = [8, 1], strides = [1, 1]} : vector<8x8xi32> to vector<8x1xi32>
    %c0_i32 = arith.constant 0 : i32
    %6 = vector.broadcast %c0_i32 : i32 to vector<8x1xi32>
    %7 = arith.addi %5, %6 : vector<8x1xi32>
    %8 = vector.broadcast %7 : vector<8x1xi32> to vector<8x256xi32>
    %9 = arith.cmpi eq, %1, %8 : vector<8x256xi32>
    %10 = arith.extui %9 : vector<8x256xi1> to vector<8x256xi32>
    %11 = arith.addi %4, %10 : vector<8x256xi32>
    %12 = vector.extract_strided_slice %0 {offsets = [0, 1], sizes = [8, 1], strides = [1, 1]} : vector<8x8xi32> to vector<8x1xi32>
    %c16_i32 = arith.constant 16 : i32
    %13 = vector.broadcast %c16_i32 : i32 to vector<8x1xi32>
    %14 = arith.addi %12, %13 : vector<8x1xi32>
    %15 = vector.broadcast %14 : vector<8x1xi32> to vector<8x256xi32>
    %16 = arith.cmpi eq, %1, %15 : vector<8x256xi32>
    %17 = arith.extui %16 : vector<8x256xi1> to vector<8x256xi32>
    %18 = arith.addi %11, %17 : vector<8x256xi32>
    %19 = vector.extract_strided_slice %0 {offsets = [0, 2], sizes = [8, 1], strides = [1, 1]} : vector<8x8xi32> to vector<8x1xi32>
    %c32_i32 = arith.constant 32 : i32
    %20 = vector.broadcast %c32_i32 : i32 to vector<8x1xi32>
    %21 = arith.addi %19, %20 : vector<8x1xi32>
    %22 = vector.broadcast %21 : vector<8x1xi32> to vector<8x256xi32>
    %23 = arith.cmpi eq, %1, %22 : vector<8x256xi32>
    %24 = arith.extui %23 : vector<8x256xi1> to vector<8x256xi32>
    %25 = arith.addi %18, %24 : vector<8x256xi32>
    %26 = vector.extract_strided_slice %0 {offsets = [0, 3], sizes = [8, 1], strides = [1, 1]} : vector<8x8xi32> to vector<8x1xi32>
    %c48_i32 = arith.constant 48 : i32
    %27 = vector.broadcast %c48_i32 : i32 to vector<8x1xi32>
    %28 = arith.addi %26, %27 : vector<8x1xi32>
    %29 = vector.broadcast %28 : vector<8x1xi32> to vector<8x256xi32>
    %30 = arith.cmpi eq, %1, %29 : vector<8x256xi32>
    %31 = arith.extui %30 : vector<8x256xi1> to vector<8x256xi32>
    %32 = arith.addi %25, %31 : vector<8x256xi32>
    %33 = vector.extract_strided_slice %0 {offsets = [0, 4], sizes = [8, 1], strides = [1, 1]} : vector<8x8xi32> to vector<8x1xi32>
    %c64_i32 = arith.constant 64 : i32
    %34 = vector.broadcast %c64_i32 : i32 to vector<8x1xi32>
    %35 = arith.addi %33, %34 : vector<8x1xi32>
    %36 = vector.broadcast %35 : vector<8x1xi32> to vector<8x256xi32>
    %37 = arith.cmpi eq, %1, %36 : vector<8x256xi32>
    %38 = arith.extui %37 : vector<8x256xi1> to vector<8x256xi32>
    %39 = arith.addi %32, %38 : vector<8x256xi32>
    %40 = vector.extract_strided_slice %0 {offsets = [0, 5], sizes = [8, 1], strides = [1, 1]} : vector<8x8xi32> to vector<8x1xi32>
    %c80_i32 = arith.constant 80 : i32
    %41 = vector.broadcast %c80_i32 : i32 to vector<8x1xi32>
    %42 = arith.addi %40, %41 : vector<8x1xi32>
    %43 = vector.broadcast %42 : vector<8x1xi32> to vector<8x256xi32>
    %44 = arith.cmpi eq, %1, %43 : vector<8x256xi32>
    %45 = arith.extui %44 : vector<8x256xi1> to vector<8x256xi32>
    %46 = arith.addi %39, %45 : vector<8x256xi32>
    %47 = vector.extract_strided_slice %0 {offsets = [0, 6], sizes = [8, 1], strides = [1, 1]} : vector<8x8xi32> to vector<8x1xi32>
    %c96_i32 = arith.constant 96 : i32
    %48 = vector.broadcast %c96_i32 : i32 to vector<8x1xi32>
    %49 = arith.addi %47, %48 : vector<8x1xi32>
    %50 = vector.broadcast %49 : vector<8x1xi32> to vector<8x256xi32>
    %51 = arith.cmpi eq, %1, %50 : vector<8x256xi32>
    %52 = arith.extui %51 : vector<8x256xi1> to vector<8x256xi32>
    %53 = arith.addi %46, %52 : vector<8x256xi32>
    %54 = vector.extract_strided_slice %0 {offsets = [0, 7], sizes = [8, 1], strides = [1, 1]} : vector<8x8xi32> to vector<8x1xi32>
    %c112_i32 = arith.constant 112 : i32
    %55 = vector.broadcast %c112_i32 : i32 to vector<8x1xi32>
    %56 = arith.addi %54, %55 : vector<8x1xi32>
    %57 = vector.broadcast %56 : vector<8x1xi32> to vector<8x256xi32>
    %58 = arith.cmpi eq, %1, %57 : vector<8x256xi32>
    %59 = arith.extui %58 : vector<8x256xi1> to vector<8x256xi32>
    %60 = arith.addi %53, %59 : vector<8x256xi32>
    %61 = arith.sitofp %60 : vector<8x256xi32> to vector<8x256xf32>
    %c0_1 = arith.constant 0 : index
    %c0_2 = arith.constant 0 : index
    %62 = vector.load %arg2[%c0_1, %c0_2] : memref<256x128xf32, #tpu.memory_space<vmem>>, vector<256x128xf32>
    %cst = arith.constant dense<0.000000e+00> : vector<8x128xf32>
    %63 = tpu.matmul %61, %62, %cst {dimension_numbers = #tpu.dot_dimension_numbers<[1], [0], [0], [1], [0, 0, 1, 1], [], []>} : vector<8x256xf32>, vector<256x128xf32>, vector<8x128xf32> -> vector<8x128xf32>
    %c0_3 = arith.constant 0 : index
    %c0_4 = arith.constant 0 : index
    %64 = vector.load %arg3[%c0_3, %c0_4] : memref<8x128xf32, #tpu.memory_space<vmem>>, vector<8x128xf32>
    tpu.vector_store %arg3[%c0_3, %c0_4], %63 {strides = array<i32>} : memref<8x128xf32, #tpu.memory_space<vmem>>, vector<8x128xf32>,
    return
  }
  func.func @transform_0(%arg0: i32) -> (i32, i32) {
    %c0_i32 = arith.constant 0 : i32
    %c0_i32_0 = arith.constant 0 : i32
    return %arg0, %c0_i32 : i32, i32
  }
  func.func @transform_1(%arg0: i32) -> (i32, i32) {
    %c0_i32 = arith.constant 0 : i32
    %c0_i32_0 = arith.constant 0 : i32
    %c0_i32_1 = arith.constant 0 : i32
    return %c0_i32, %c0_i32_0 : i32, i32
  }
  func.func @transform_2(%arg0: i32) -> (i32, i32) {
    %c0_i32 = arith.constant 0 : i32
    %c0_i32_0 = arith.constant 0 : i32
    return %arg0, %c0_i32 : i32, i32
  }
}

module attributes {stable_mosaic.version = 11 : i64} {
  func.func @_fold_kernel(%arg0: i32, %arg1: memref<8x8xi32, #tpu.memory_space<vmem>>, %arg2: memref<256x128xf32, #tpu.memory_space<vmem>>, %arg3: memref<8x128xf32, #tpu.memory_space<vmem>>) attributes {dimension_semantics = [#tpu.dimension_semantics<parallel>], iteration_bounds = array<i64: 1>, scalar_prefetch = 0 : i64, scratch_operands = 0 : i64, tpu.core_type = #tpu.core_type<tc>, window_params = [{transform_indices = @transform_0, window_bounds = array<i64: 8, 8>}, {pipeline_mode = #tpu.pipeline_mode<synchronous>, transform_indices = @transform_1, window_bounds = array<i64: 256, 128>}, {transform_indices = @transform_2, window_bounds = array<i64: 8, 128>}]} {
    %c0 = arith.constant 0 : index
    %c0_0 = arith.constant 0 : index
    %0 = vector.load %arg1[%c0, %c0_0] : memref<8x8xi32, #tpu.memory_space<vmem>>, vector<8x8xi32>
    %1 = tpu.iota {dimensions = array<i32: 1>} : vector<8x256xi32>
    %c128_i32 = arith.constant 128 : i32
    %2 = vector.broadcast %c128_i32 : i32 to vector<8x256xi32>
    %3 = arith.cmpi eq, %1, %2 : vector<8x256xi32>
    %4 = arith.extui %3 : vector<8x256xi1> to vector<8x256xi32>
    %5 = vector.extract_strided_slice %0 {offsets = [0, 0], sizes = [8, 1], strides = [1, 1]} : vector<8x8xi32> to vector<8x1xi32>
    %c0_i32 = arith.constant 0 : i32
    %6 = vector.broadcast %c0_i32 : i32 to vector<8x1xi32>
    %7 = arith.addi %5, %6 : vector<8x1xi32>
    %8 = vector.broadcast %7 : vector<8x1xi32> to vector<8x256xi32>
    %9 = arith.cmpi eq, %1, %8 : vector<8x256xi32>
    %10 = arith.extui %9 : vector<8x256xi1> to vector<8x256xi32>
    %11 = arith.addi %4, %10 : vector<8x256xi32>
    %12 = vector.extract_strided_slice %0 {offsets = [0, 1], sizes = [8, 1], strides = [1, 1]} : vector<8x8xi32> to vector<8x1xi32>
    %c16_i32 = arith.constant 16 : i32
    %13 = vector.broadcast %c16_i32 : i32 to vector<8x1xi32>
    %14 = arith.addi %12, %13 : vector<8x1xi32>
    %15 = vector.broadcast %14 : vector<8x1xi32> to vector<8x256xi32>
    %16 = arith.cmpi eq, %1, %15 : vector<8x256xi32>
    %17 = arith.extui %16 : vector<8x256xi1> to vector<8x256xi32>
    %18 = arith.addi %11, %17 : vector<8x256xi32>
    %19 = vector.extract_strided_slice %0 {offsets = [0, 2], sizes = [8, 1], strides = [1, 1]} : vector<8x8xi32> to vector<8x1xi32>
    %c32_i32 = arith.constant 32 : i32
    %20 = vector.broadcast %c32_i32 : i32 to vector<8x1xi32>
    %21 = arith.addi %19, %20 : vector<8x1xi32>
    %22 = vector.broadcast %21 : vector<8x1xi32> to vector<8x256xi32>
    %23 = arith.cmpi eq, %1, %22 : vector<8x256xi32>
    %24 = arith.extui %23 : vector<8x256xi1> to vector<8x256xi32>
    %25 = arith.addi %18, %24 : vector<8x256xi32>
    %26 = vector.extract_strided_slice %0 {offsets = [0, 3], sizes = [8, 1], strides = [1, 1]} : vector<8x8xi32> to vector<8x1xi32>
    %c48_i32 = arith.constant 48 : i32
    %27 = vector.broadcast %c48_i32 : i32 to vector<8x1xi32>
    %28 = arith.addi %26, %27 : vector<8x1xi32>
    %29 = vector.broadcast %28 : vector<8x1xi32> to vector<8x256xi32>
    %30 = arith.cmpi eq, %1, %29 : vector<8x256xi32>
    %31 = arith.extui %30 : vector<8x256xi1> to vector<8x256xi32>
    %32 = arith.addi %25, %31 : vector<8x256xi32>
    %33 = vector.extract_strided_slice %0 {offsets = [0, 4], sizes = [8, 1], strides = [1, 1]} : vector<8x8xi32> to vector<8x1xi32>
    %c64_i32 = arith.constant 64 : i32
    %34 = vector.broadcast %c64_i32 : i32 to vector<8x1xi32>
    %35 = arith.addi %33, %34 : vector<8x1xi32>
    %36 = vector.broadcast %35 : vector<8x1xi32> to vector<8x256xi32>
    %37 = arith.cmpi eq, %1, %36 : vector<8x256xi32>
    %38 = arith.extui %37 : vector<8x256xi1> to vector<8x256xi32>
    %39 = arith.addi %32, %38 : vector<8x256xi32>
    %40 = vector.extract_strided_slice %0 {offsets = [0, 5], sizes = [8, 1], strides = [1, 1]} : vector<8x8xi32> to vector<8x1xi32>
    %c80_i32 = arith.constant 80 : i32
    %41 = vector.broadcast %c80_i32 : i32 to vector<8x1xi32>
    %42 = arith.addi %40, %41 : vector<8x1xi32>
    %43 = vector.broadcast %42 : vector<8x1xi32> to vector<8x256xi32>
    %44 = arith.cmpi eq, %1, %43 : vector<8x256xi32>
    %45 = arith.extui %44 : vector<8x256xi1> to vector<8x256xi32>
    %46 = arith.addi %39, %45 : vector<8x256xi32>
    %47 = vector.extract_strided_slice %0 {offsets = [0, 6], sizes = [8, 1], strides = [1, 1]} : vector<8x8xi32> to vector<8x1xi32>
    %c96_i32 = arith.constant 96 : i32
    %48 = vector.broadcast %c96_i32 : i32 to vector<8x1xi32>
    %49 = arith.addi %47, %48 : vector<8x1xi32>
    %50 = vector.broadcast %49 : vector<8x1xi32> to vector<8x256xi32>
    %51 = arith.cmpi eq, %1, %50 : vector<8x256xi32>
    %52 = arith.extui %51 : vector<8x256xi1> to vector<8x256xi32>
    %53 = arith.addi %46, %52 : vector<8x256xi32>
    %54 = vector.extract_strided_slice %0 {offsets = [0, 7], sizes = [8, 1], strides = [1, 1]} : vector<8x8xi32> to vector<8x1xi32>
    %c112_i32 = arith.constant 112 : i32
    %55 = vector.broadcast %c112_i32 : i32 to vector<8x1xi32>
    %56 = arith.addi %54, %55 : vector<8x1xi32>
    %57 = vector.broadcast %56 : vector<8x1xi32> to vector<8x256xi32>
    %58 = arith.cmpi eq, %1, %57 : vector<8x256xi32>
    %59 = arith.extui %58 : vector<8x256xi1> to vector<8x256xi32>
    %60 = arith.addi %53, %59 : vector<8x256xi32>
    %61 = arith.sitofp %60 : vector<8x256xi32> to vector<8x256xf32>
    %c0_1 = arith.constant 0 : index
    %c0_2 = arith.constant 0 : index
    %62 = vector.load %arg2[%c0_1, %c0_2] : memref<256x128xf32, #tpu.memory_space<vmem>>, vector<256x128xf32>
    %cst = arith.constant dense<0.000000e+00> : vector<8x128xf32>
    %63 = tpu.matmul %61, %62, %cst {dimension_numbers = #tpu.dot_dimension_numbers<[1], [0], [0], [1], [0, 0, 1, 1], [], []>} : vector<8x256xf32>, vector<256x128xf32>, vector<8x128xf32> -> vector<8x128xf32>
    %c0_3 = arith.constant 0 : index
    %c0_4 = arith.constant 0 : index
    %64 = vector.load %arg3[%c0_3, %c0_4] : memref<8x128xf32, #tpu.memory_space<vmem>>, vector<8x128xf32>
    tpu.vector_store %arg3[%c0_3, %c0_4], %63 {strides = array<i32>} : memref<8x128xf32, #tpu.memory_space<vmem>>, vector<8x128xf32>,
    return
  }
  func.func @transform_0(%arg0: i32) -> (i32, i32) {
    %c0_i32 = arith.constant 0 : i32
    %c0_i32_0 = arith.constant 0 : i32
    return %arg0, %c0_i32 : i32, i32
  }
  func.func @transform_1(%arg0: i32) -> (i32, i32) {
    %c0_i32 = arith.constant 0 : i32
    %c0_i32_0 = arith.constant 0 : i32
    %c0_i32_1 = arith.constant 0 : i32
    return %c0_i32, %c0_i32_0 : i32, i32
  }
  func.func @transform_2(%arg0: i32) -> (i32, i32) {
    %c0_i32 = arith.constant 0 : i32
    %c0_i32_0 = arith.constant 0 : i32
    return %arg0, %c0_i32 : i32, i32
  }
}

</mosaic_0001>

<bundles_post_ra>
// kernel: tpu_custom_call.1
= control target key start
LH: loop header
LB: loop body
LE: loop exit
PB: predicated region body
PF: predicated region fallthrough
CT: control target
= control target key end

     0   :  { %7 = vsyncpa [#allocation3], 0  ;;  %s377_s0 = inlined_call_operand.hbm [shape: s32[8,8], index: 0, kind: input, shape index: {}]   ;;  %s378_s1 = inlined_call_operand.hbm [shape: f32[256,128], index: 1, kind: input, shape index: {}]   ;;  %s379_s2 = inlined_call_operand.hbm [shape: f32[8,128], index: 2, kind: output, shape index: {}]  }
   0x1   :  { %8 = vsyncpa [#allocation6], 0 }
   0x2   :  { %9 = vsyncpa [#allocation4], 0  ;;  %s15_s11 = sshll.u32 %s377_s0, 4  ;;  %s322_s12 = smov [#allocation2]   ;;  %s16_s11 = int_to_ptr.hbm [resolvable:$true] %s15_s11 }
   0x3   :  { %s17_s13 = sshll.u32 %s322_s12, 4  ;;  %s25_s16 = sshll.u32 %s378_s1, 4  ;;  %s18_s13 = int_to_ptr.vmem [resolvable:$true] %s17_s13  ;;  %s26_s16 = int_to_ptr.hbm [resolvable:$true] %s25_s16 }
   0x4   :  { %20 = dma.hbm_to_vmem [thread:$0]  %s16_s11, 128, %s18_s13, [#allocation3]  }
   0x5   :  { %s323_s17 = smov [#allocation5]   ;;  %s324_s19 = smov 128  }
   0x6   :  { %s27_s18 = sshll.u32 %s323_s17, 4  ;;  %s325_s20 = smov 8   ;;  %s28_s18 = int_to_ptr.vmem [resolvable:$true] %s27_s18 }
   0x7   :  { %33 = dma.hbm_to_vmem [thread:$0]  %s26_s16, 4096, %s28_s18, [#allocation6], %s324_s19, %s324_s19, %s325_s20  }
   0x8   :  { %316 = dma.done.wait [#allocation3], 128  }
   0x9   :  { %317 = vsyncadd [#allocation3], 4294967168 }
   0xa   :  { %318 = dma.done.wait [#allocation6], 4096  }
   0xb   :  { %319 = vsyncadd [#allocation6], 4294963200  ;;  %v326_v0 = vmov 0   ;;  %v327_v1 = vmov 2   ;;  %v328_v2 = vmov 4   ;;  %v42_v3 = vld [vmem:[#allocation2] sm:$0xff]  ;;  %v43_v42 = vlaneseq }
   0xc   :  { %235 = vset.pattern.permute.xlu0 %v326_v0  ;;  %237 = vset.pattern.permute.xlu1 %v327_v1  ;;  %v146_v4 = vld [vmem:[#allocation5 + $0x78] sm:$0xff]  ;;  %v69_v6 = vadd.s32 32, %v42_v3  ;;  %v145_v7 = vld [vmem:[#allocation5 + $0x70] sm:$0xff]  ;;  %v89_v9 = vadd.s32 64, %v42_v3  ;;  %v59_v10 = vadd.s32 16, %v42_v3  ;;  %v79_v11 = vadd.s32 48, %v42_v3 }
   0xd   :  { %239 = vset.pattern.permute.xlu2 %v328_v2  ;;  %v162_v5 = vld [vmem:[#allocation5 + $0xf8] sm:$0xff]  ;;  %51 = vperm.xlu0 %235, %v42_v3   ;;  %v161_v8 = vld [vmem:[#allocation5 + $0xf0] sm:$0xff]  ;;  %v329_v12 = vmov 1   ;;  %v99_v13 = vadd.s32 80, %v42_v3  ;;  %v330_v14 = vmov 3   ;;  %v331_v15 = vmov 5  }
   0xe   :  { %163 = vmatpush.msra.mxu0 %v146_v4  ;;  %183 = vmatpush.msra.mxu1 %v162_v5  ;;  %v109_v16 = vadd.s32 96, %v42_v3  ;;  %v119_v17 = vadd.s32 112, %v42_v3  ;;  %v332_v18 = vmov 7   ;;  %v333_v19 = vmov 6   ;;  %v144_v20 = vld [vmem:[#allocation5 + $0x68] sm:$0xff]  ;;  %v143_v22 = vld [vmem:[#allocation5 + $0x60] sm:$0xff] }
   0xf   :  { %71 = vperm.xlu1 %237, %v69_v6   ;;  %91 = vperm.xlu2 %239, %v89_v9   ;;  %v160_v21 = vld [vmem:[#allocation5 + $0xe8] sm:$0xff]  ;;  %v159_v23 = vld [vmem:[#allocation5 + $0xe0] sm:$0xff]  ;;  %v142_v24 = vld [vmem:[#allocation5 + $0x58] sm:$0xff]  ;;  %v44_v49 = vand.u32 127, %v43_v42  ;;  %s334_s0 = smov [#allocation7]   ;;  %s211_s23 = sshll.u32 %s379_s2, 4  ;;  %s212_s23 = int_to_ptr.hbm [resolvable:$true] %s211_s23 }
  0x10   :  { %164 = vmatpush.msra.mxu0 %v145_v7  ;;  %184 = vmatpush.msra.mxu1 %v161_v8  ;;  %v158_v25 = vld [vmem:[#allocation5 + $0xd8] sm:$0xff]  ;;  %v141_v26 = vld [vmem:[#allocation5 + $0x50] sm:$0xff]  ;;  %v140_v28 = vld [vmem:[#allocation5 + $0x48] sm:$0xff]  ;;  %s209_s1 = sshll.u32 %s334_s0, 4  ;;  %s210_s1 = int_to_ptr.vmem [resolvable:$true] %s209_s1 }
  0x11   :  { %v157_v27 = vld [vmem:[#allocation5 + $0xd0] sm:$0xff]  ;;  %v156_v29 = vld [vmem:[#allocation5 + $0xc8] sm:$0xff]  ;;  %v139_v30 = vld [vmem:[#allocation5 + $0x40] sm:$0xff]  ;;  %v45_v51 = vadd.s32 128, %v44_v49 }
  0x12   :  { %165 = vmatpush.msra.mxu0 %v144_v20  ;;  %185 = vmatpush.msra.mxu1 %v160_v21  ;;  %v155_v31 = vld [vmem:[#allocation5 + $0xc0] sm:$0xff]  ;;  %v138_v32 = vld [vmem:[#allocation5 + $0x38] sm:$0xff]  ;;  %v137_v34 = vld [vmem:[#allocation5 + $0x30] sm:$0xff] }
  0x13   :  { %v154_v33 = vld [vmem:[#allocation5 + $0xb8] sm:$0xff]  ;;  %v153_v35 = vld [vmem:[#allocation5 + $0xb0] sm:$0xff]  ;;  %v136_v36 = vld [vmem:[#allocation5 + $0x28] sm:$0xff]  ;;  %vm47_vm0 = vcmp.eq.s32.totalorder %v45_v51, 128 }
  0x14   :  { %166 = vmatpush.msra.mxu0 %v143_v22  ;;  %186 = vmatpush.msra.mxu1 %v159_v23  ;;  %v152_v37 = vld [vmem:[#allocation5 + $0xa8] sm:$0xff]  ;;  %v135_v38 = vld [vmem:[#allocation5 + $0x20] sm:$0xff]  ;;  %v134_v40 = vld [vmem:[#allocation5 + $0x18] sm:$0xff]  ;;  %v49_v54 = vsel %vm47_vm0, 1, %v326_v0 }
  0x15   :  { %236 = vset.pattern.permute.xlu0 %v329_v12  ;;  %v151_v39 = vld [vmem:[#allocation5 + $0xa0] sm:$0xff]  ;;  %v150_v41 = vld [vmem:[#allocation5 + $0x98] sm:$0xff]  ;;  %v133_v43 = vld [vmem:[#allocation5 + $0x10] sm:$0xff] }
  0x16   :  { %61 = vperm.xlu0 %236, %v59_v10   ;;  %167 = vmatpush.msra.mxu0 %v142_v24  ;;  %v149_v44 = vld [vmem:[#allocation5 + $0x90] sm:$0xff]  ;;  %v132_v45 = vld [vmem:[#allocation5 + $0x8] sm:$0xff]  ;;  %v131_v47 = vld [vmem:[#allocation5] sm:$0xff] }
  0x17   :  { %238 = vset.pattern.permute.xlu1 %v330_v14  ;;  %240 = vset.pattern.permute.xlu2 %v331_v15  ;;  %v148_v46 = vld [vmem:[#allocation5 + $0x88] sm:$0xff]  ;;  %v147_v48 = vld [vmem:[#allocation5 + $0x80] sm:$0xff] }
  0x18   :  { %81 = vperm.xlu1 %238, %v79_v11   ;;  %101 = vperm.xlu2 %240, %v99_v13  }
  0x19   :  { %187 = vmatpush.msra.mxu1 %v158_v25  ;;  %168 = vmatpush.msra.mxu0 %v141_v26 }
  0x1b   :  { %188 = vmatpush.msra.mxu1 %v157_v27  ;;  %169 = vmatpush.msra.mxu0 %v140_v28 }
  0x1d   :  { %189 = vmatpush.msra.mxu1 %v156_v29  ;;  %170 = vmatpush.msra.mxu0 %v139_v30 }
  0x1e   :  { %243 = vset.pattern.permute.xlu0 %v332_v18 }
  0x1f   :  { %190 = vmatpush.msra.mxu1 %v155_v31  ;;  %171 = vmatpush.msra.mxu0 %v138_v32 }
  0x20   :  { %241 = vset.pattern.permute.xlu1 %v333_v19  ;;  %242 = vset.pattern.permute.xlu2 %v332_v18 }
  0x21   :  { %111 = vperm.xlu1 %241, %v109_v16   ;;  %121 = vperm.xlu2 %242, %v119_v17  }
  0x22   :  { %191 = vmatpush.msra.mxu1 %v154_v33  ;;  %172 = vmatpush.msra.mxu0 %v137_v34 }
  0x24   :  { %192 = vmatpush.msra.mxu1 %v153_v35  ;;  %173 = vmatpush.msra.mxu0 %v136_v36 }
  0x26   :  { %193 = vmatpush.msra.mxu1 %v152_v37  ;;  %174 = vmatpush.msra.mxu0 %v135_v38 }
  0x28   :  { %194 = vmatpush.msra.mxu1 %v151_v39  ;;  %175 = vmatpush.msra.mxu0 %v134_v40 }
  0x2a   :  { %195 = vmatpush.msra.mxu1 %v150_v41  ;;  %176 = vmatpush.msra.mxu0 %v133_v43 }
  0x2c   :  { %196 = vmatpush.msra.mxu1 %v149_v44  ;;  %177 = vmatpush.msra.mxu0 %v132_v45 }
  0x2e   :  { %197 = vmatpush.msra.mxu1 %v148_v46  ;;  %178 = vmatpush.msra.mxu0 %v131_v47 }
  0x30   :  { %198 = vmatpush.msra.mxu1 %v147_v48 }
  0x69   :  { %v92_v50 = vpop.permute.xlu2 %91 }
  0x6a   :  { %vm93_vm9 = vcmp.eq.s32.totalorder %v44_v49, %v92_v50  ;;  %vm94_vm10 = vcmp.eq.s32.totalorder %v45_v51, %v92_v50 }
  0x6b   :  { %v95_v11 = vsel %vm93_vm9, 1, %v326_v0  ;;  %v96_v12 = vsel %vm94_vm10, 1, %v326_v0 }
  0x72   :  { %v102_v56 = vpop.permute.xlu2 %101 }
  0x73   :  { %vm103_vm11 = vcmp.eq.s32.totalorder %v44_v49, %v102_v56  ;;  %vm104_vm12 = vcmp.eq.s32.totalorder %v45_v51, %v102_v56 }
  0x74   :  { %v105_v15 = vsel %vm103_vm11, 1, %v326_v0  ;;  %v106_v16 = vsel %vm104_vm12, 1, %v326_v0 }
  0x7b   :  { %v122_v10 = vpop.permute.xlu2 %121 }
  0x7c   :  { %vm123_vm13 = vcmp.eq.s32.totalorder %v44_v49, %v122_v10  ;;  %vm124_vm14 = vcmp.eq.s32.totalorder %v45_v51, %v122_v10 }
  0x7d   :  { %v125_v22 = vsel %vm123_vm13, 1, %v326_v0  ;;  %v126_v23 = vsel %vm124_vm14, 1, %v326_v0 }
  0x7f   :  { %v52_v52 = vpop.permute.xlu0 %51 }
  0x80   :  { %vm54_vm1 = vcmp.eq.s32.totalorder %v45_v51, %v52_v52  ;;  %vm53_vm2 = vcmp.eq.s32.totalorder %v44_v49, %v52_v52 }
  0x81   :  { %v72_v53 = vpop.permute.xlu1 %71  ;;  %v56_v55 = vsel %vm54_vm1, 1, %v326_v0  ;;  %v55_v59 = vsel %vm53_vm2, 1, %v326_v0 }
  0x82   :  { %v58_v57 = vadd.s32 %v56_v55, %v49_v54  ;;  %vm73_vm3 = vcmp.eq.s32.totalorder %v44_v49, %v72_v53  ;;  %vm74_vm4 = vcmp.eq.s32.totalorder %v45_v51, %v72_v53 }
  0x83   :  { %v75_v2 = vsel %vm73_vm3, 1, %v326_v0  ;;  %v76_v3 = vsel %vm74_vm4, 1, %v326_v0 }
  0x88   :  { %v62_v58 = vpop.permute.xlu0 %61 }
  0x89   :  { %vm63_vm5 = vcmp.eq.s32.totalorder %v44_v49, %v62_v58  ;;  %vm64_vm6 = vcmp.eq.s32.totalorder %v45_v51, %v62_v58 }
  0x8a   :  { %v65_v60 = vsel %vm63_vm5, 1, %v326_v0  ;;  %v66_v61 = vsel %vm64_vm6, 1, %v326_v0  ;;  %v82_v62 = vpop.permute.xlu1 %81 }
  0x8b   :  { %v67_v63 = vadd.s32 %v65_v60, %v55_v59  ;;  %v68_v1 = vadd.s32 %v66_v61, %v58_v57  ;;  %vm83_vm7 = vcmp.eq.s32.totalorder %v44_v49, %v82_v62  ;;  %vm84_vm8 = vcmp.eq.s32.totalorder %v45_v51, %v82_v62 }
  0x8c   :  { %v85_v6 = vsel %vm83_vm7, 1, %v326_v0  ;;  %v86_v7 = vsel %vm84_vm8, 1, %v326_v0 }
  0x8d   :  { %v77_v4 = vadd.s32 %v75_v2, %v67_v63  ;;  %v78_v5 = vadd.s32 %v76_v3, %v68_v1 }
  0x8f   :  { %v87_v8 = vadd.s32 %v85_v6, %v77_v4  ;;  %v88_v9 = vadd.s32 %v86_v7, %v78_v5 }
  0x91   :  { %v97_v13 = vadd.s32 %v95_v11, %v87_v8  ;;  %v98_v14 = vadd.s32 %v96_v12, %v88_v9 }
  0x93   :  { %v107_v17 = vadd.s32 %v105_v15, %v97_v13  ;;  %v108_v18 = vadd.s32 %v106_v16, %v98_v14  ;;  %v112_v19 = vpop.permute.xlu1 %111 }
  0x94   :  { %vm113_vm15 = vcmp.eq.s32.totalorder %v44_v49, %v112_v19  ;;  %vm114_vm0 = vcmp.eq.s32.totalorder %v45_v51, %v112_v19 }
  0x95   :  { %v115_v20 = vsel %vm113_vm15, 1, %v326_v0  ;;  %v116_v21 = vsel %vm114_vm0, 1, %v326_v0 }
  0x96   :  { %v117_v24 = vadd.s32 %v115_v20, %v107_v17  ;;  %v118_v25 = vadd.s32 %v116_v21, %v108_v18 }
  0x98   :  { %v127_v26 = vadd.s32 %v125_v22, %v117_v24  ;;  %v128_v27 = vadd.s32 %v126_v23, %v118_v25 }
  0x9a   :  { %v129_v28 = vcvt.s32.f32 %v127_v26  ;;  %v130_v29 = vcvt.s32.f32 %v128_v27 }
  0x9c   :  { %179 = vmatmul.f32.vlgmr.msra.gmra.mxu0 %v129_v28  ;;  %199 = vmatmul.f32.vlgmr.msra.gmra.mxu1 %v130_v29 }
 0x119   :  { %v180_v30 = vpop.f32.mrf.mxu0  ;;  %v200_v31 = vpop.f32.mrf.mxu1 }
 0x11a   :  { %v201_v32 = vadd.f32 %v200_v31, %v180_v30 }
 0x11c   :  { %203 = vst [vmem:[#allocation7] sm:$0xff] %v201_v32 }
 0x11d   :  { %214 = dma.vmem_to_hbm [thread:$0]  %s210_s1, 128, %s212_s23, [#allocation4]  }
 0x11e   :  { %320 = dma.done.wait [#allocation4], 128  }
 0x11f   :  { %321 = vsyncadd [#allocation4], 4294967168 }
 0x120   :  { %219 = vsyncpa [#allocation3], 1 }
 0x121   :  { %220 = vsyncpa [#allocation6], 1 }
 0x122   :  { %221 = vsyncpa [#allocation4], 1 }

// kernel: tpu_custom_call.1
= control target key start
LH: loop header
LB: loop body
LE: loop exit
PB: predicated region body
PF: predicated region fallthrough
CT: control target
= control target key end

     0   :  { %7 = vsyncpa [#allocation3], 0  ;;  %s377_s0 = inlined_call_operand.hbm [shape: s32[8,8], index: 0, kind: input, shape index: {}]   ;;  %s378_s1 = inlined_call_operand.hbm [shape: f32[256,128], index: 1, kind: input, shape index: {}]   ;;  %s379_s2 = inlined_call_operand.hbm [shape: f32[8,128], index: 2, kind: output, shape index: {}]  }
   0x1   :  { %8 = vsyncpa [#allocation6], 0 }
   0x2   :  { %9 = vsyncpa [#allocation4], 0  ;;  %s15_s11 = sshll.u32 %s377_s0, 4  ;;  %s322_s12 = smov [#allocation2]   ;;  %s16_s11 = int_to_ptr.hbm [resolvable:$true] %s15_s11 }
   0x3   :  { %s17_s13 = sshll.u32 %s322_s12, 4  ;;  %s25_s16 = sshll.u32 %s378_s1, 4  ;;  %s18_s13 = int_to_ptr.vmem [resolvable:$true] %s17_s13  ;;  %s26_s16 = int_to_ptr.hbm [resolvable:$true] %s25_s16 }
   0x4   :  { %20 = dma.hbm_to_vmem [thread:$0]  %s16_s11, 128, %s18_s13, [#allocation3]  }
   0x5   :  { %s323_s17 = smov [#allocation5]   ;;  %s324_s19 = smov 128  }
   0x6   :  { %s27_s18 = sshll.u32 %s323_s17, 4  ;;  %s325_s20 = smov 8   ;;  %s28_s18 = int_to_ptr.vmem [resolvable:$true] %s27_s18 }
   0x7   :  { %33 = dma.hbm_to_vmem [thread:$0]  %s26_s16, 4096, %s28_s18, [#allocation6], %s324_s19, %s324_s19, %s325_s20  }
   0x8   :  { %316 = dma.done.wait [#allocation3], 128  }
   0x9   :  { %317 = vsyncadd [#allocation3], 4294967168 }
   0xa   :  { %318 = dma.done.wait [#allocation6], 4096  }
   0xb   :  { %319 = vsyncadd [#allocation6], 4294963200  ;;  %v326_v0 = vmov 0   ;;  %v327_v1 = vmov 2   ;;  %v328_v2 = vmov 4   ;;  %v42_v3 = vld [vmem:[#allocation2] sm:$0xff]  ;;  %v43_v42 = vlaneseq }
   0xc   :  { %235 = vset.pattern.permute.xlu0 %v326_v0  ;;  %237 = vset.pattern.permute.xlu1 %v327_v1  ;;  %v146_v4 = vld [vmem:[#allocation5 + $0x78] sm:$0xff]  ;;  %v69_v6 = vadd.s32 32, %v42_v3  ;;  %v145_v7 = vld [vmem:[#allocation5 + $0x70] sm:$0xff]  ;;  %v89_v9 = vadd.s32 64, %v42_v3  ;;  %v59_v10 = vadd.s32 16, %v42_v3  ;;  %v79_v11 = vadd.s32 48, %v42_v3 }
   0xd   :  { %239 = vset.pattern.permute.xlu2 %v328_v2  ;;  %v162_v5 = vld [vmem:[#allocation5 + $0xf8] sm:$0xff]  ;;  %51 = vperm.xlu0 %235, %v42_v3   ;;  %v161_v8 = vld [vmem:[#allocation5 + $0xf0] sm:$0xff]  ;;  %v329_v12 = vmov 1   ;;  %v99_v13 = vadd.s32 80, %v42_v3  ;;  %v330_v14 = vmov 3   ;;  %v331_v15 = vmov 5  }
   0xe   :  { %163 = vmatpush.msra.mxu0 %v146_v4  ;;  %183 = vmatpush.msra.mxu1 %v162_v5  ;;  %v109_v16 = vadd.s32 96, %v42_v3  ;;  %v119_v17 = vadd.s32 112, %v42_v3  ;;  %v332_v18 = vmov 7   ;;  %v333_v19 = vmov 6   ;;  %v144_v20 = vld [vmem:[#allocation5 + $0x68] sm:$0xff]  ;;  %v143_v22 = vld [vmem:[#allocation5 + $0x60] sm:$0xff] }
   0xf   :  { %71 = vperm.xlu1 %237, %v69_v6   ;;  %91 = vperm.xlu2 %239, %v89_v9   ;;  %v160_v21 = vld [vmem:[#allocation5 + $0xe8] sm:$0xff]  ;;  %v159_v23 = vld [vmem:[#allocation5 + $0xe0] sm:$0xff]  ;;  %v142_v24 = vld [vmem:[#allocation5 + $0x58] sm:$0xff]  ;;  %v44_v49 = vand.u32 127, %v43_v42  ;;  %s334_s0 = smov [#allocation7]   ;;  %s211_s23 = sshll.u32 %s379_s2, 4  ;;  %s212_s23 = int_to_ptr.hbm [resolvable:$true] %s211_s23 }
  0x10   :  { %164 = vmatpush.msra.mxu0 %v145_v7  ;;  %184 = vmatpush.msra.mxu1 %v161_v8  ;;  %v158_v25 = vld [vmem:[#allocation5 + $0xd8] sm:$0xff]  ;;  %v141_v26 = vld [vmem:[#allocation5 + $0x50] sm:$0xff]  ;;  %v140_v28 = vld [vmem:[#allocation5 + $0x48] sm:$0xff]  ;;  %s209_s1 = sshll.u32 %s334_s0, 4  ;;  %s210_s1 = int_to_ptr.vmem [resolvable:$true] %s209_s1 }
  0x11   :  { %v157_v27 = vld [vmem:[#allocation5 + $0xd0] sm:$0xff]  ;;  %v156_v29 = vld [vmem:[#allocation5 + $0xc8] sm:$0xff]  ;;  %v139_v30 = vld [vmem:[#allocation5 + $0x40] sm:$0xff]  ;;  %v45_v51 = vadd.s32 128, %v44_v49 }
  0x12   :  { %165 = vmatpush.msra.mxu0 %v144_v20  ;;  %185 = vmatpush.msra.mxu1 %v160_v21  ;;  %v155_v31 = vld [vmem:[#allocation5 + $0xc0] sm:$0xff]  ;;  %v138_v32 = vld [vmem:[#allocation5 + $0x38] sm:$0xff]  ;;  %v137_v34 = vld [vmem:[#allocation5 + $0x30] sm:$0xff] }
  0x13   :  { %v154_v33 = vld [vmem:[#allocation5 + $0xb8] sm:$0xff]  ;;  %v153_v35 = vld [vmem:[#allocation5 + $0xb0] sm:$0xff]  ;;  %v136_v36 = vld [vmem:[#allocation5 + $0x28] sm:$0xff]  ;;  %vm47_vm0 = vcmp.eq.s32.totalorder %v45_v51, 128 }
  0x14   :  { %166 = vmatpush.msra.mxu0 %v143_v22  ;;  %186 = vmatpush.msra.mxu1 %v159_v23  ;;  %v152_v37 = vld [vmem:[#allocation5 + $0xa8] sm:$0xff]  ;;  %v135_v38 = vld [vmem:[#allocation5 + $0x20] sm:$0xff]  ;;  %v134_v40 = vld [vmem:[#allocation5 + $0x18] sm:$0xff]  ;;  %v49_v54 = vsel %vm47_vm0, 1, %v326_v0 }
  0x15   :  { %236 = vset.pattern.permute.xlu0 %v329_v12  ;;  %v151_v39 = vld [vmem:[#allocation5 + $0xa0] sm:$0xff]  ;;  %v150_v41 = vld [vmem:[#allocation5 + $0x98] sm:$0xff]  ;;  %v133_v43 = vld [vmem:[#allocation5 + $0x10] sm:$0xff] }
  0x16   :  { %61 = vperm.xlu0 %236, %v59_v10   ;;  %167 = vmatpush.msra.mxu0 %v142_v24  ;;  %v149_v44 = vld [vmem:[#allocation5 + $0x90] sm:$0xff]  ;;  %v132_v45 = vld [vmem:[#allocation5 + $0x8] sm:$0xff]  ;;  %v131_v47 = vld [vmem:[#allocation5] sm:$0xff] }
  0x17   :  { %238 = vset.pattern.permute.xlu1 %v330_v14  ;;  %240 = vset.pattern.permute.xlu2 %v331_v15  ;;  %v148_v46 = vld [vmem:[#allocation5 + $0x88] sm:$0xff]  ;;  %v147_v48 = vld [vmem:[#allocation5 + $0x80] sm:$0xff] }
  0x18   :  { %81 = vperm.xlu1 %238, %v79_v11   ;;  %101 = vperm.xlu2 %240, %v99_v13  }
  0x19   :  { %187 = vmatpush.msra.mxu1 %v158_v25  ;;  %168 = vmatpush.msra.mxu0 %v141_v26 }
  0x1b   :  { %188 = vmatpush.msra.mxu1 %v157_v27  ;;  %169 = vmatpush.msra.mxu0 %v140_v28 }
  0x1d   :  { %189 = vmatpush.msra.mxu1 %v156_v29  ;;  %170 = vmatpush.msra.mxu0 %v139_v30 }
  0x1e   :  { %243 = vset.pattern.permute.xlu0 %v332_v18 }
  0x1f   :  { %190 = vmatpush.msra.mxu1 %v155_v31  ;;  %171 = vmatpush.msra.mxu0 %v138_v32 }
  0x20   :  { %241 = vset.pattern.permute.xlu1 %v333_v19  ;;  %242 = vset.pattern.permute.xlu2 %v332_v18 }
  0x21   :  { %111 = vperm.xlu1 %241, %v109_v16   ;;  %121 = vperm.xlu2 %242, %v119_v17  }
  0x22   :  { %191 = vmatpush.msra.mxu1 %v154_v33  ;;  %172 = vmatpush.msra.mxu0 %v137_v34 }
  0x24   :  { %192 = vmatpush.msra.mxu1 %v153_v35  ;;  %173 = vmatpush.msra.mxu0 %v136_v36 }
  0x26   :  { %193 = vmatpush.msra.mxu1 %v152_v37  ;;  %174 = vmatpush.msra.mxu0 %v135_v38 }
  0x28   :  { %194 = vmatpush.msra.mxu1 %v151_v39  ;;  %175 = vmatpush.msra.mxu0 %v134_v40 }
  0x2a   :  { %195 = vmatpush.msra.mxu1 %v150_v41  ;;  %176 = vmatpush.msra.mxu0 %v133_v43 }
  0x2c   :  { %196 = vmatpush.msra.mxu1 %v149_v44  ;;  %177 = vmatpush.msra.mxu0 %v132_v45 }
  0x2e   :  { %197 = vmatpush.msra.mxu1 %v148_v46  ;;  %178 = vmatpush.msra.mxu0 %v131_v47 }
  0x30   :  { %198 = vmatpush.msra.mxu1 %v147_v48 }
  0x69   :  { %v92_v50 = vpop.permute.xlu2 %91 }
  0x6a   :  { %vm93_vm9 = vcmp.eq.s32.totalorder %v44_v49, %v92_v50  ;;  %vm94_vm10 = vcmp.eq.s32.totalorder %v45_v51, %v92_v50 }
  0x6b   :  { %v95_v11 = vsel %vm93_vm9, 1, %v326_v0  ;;  %v96_v12 = vsel %vm94_vm10, 1, %v326_v0 }
  0x72   :  { %v102_v56 = vpop.permute.xlu2 %101 }
  0x73   :  { %vm103_vm11 = vcmp.eq.s32.totalorder %v44_v49, %v102_v56  ;;  %vm104_vm12 = vcmp.eq.s32.totalorder %v45_v51, %v102_v56 }
  0x74   :  { %v105_v15 = vsel %vm103_vm11, 1, %v326_v0  ;;  %v106_v16 = vsel %vm104_vm12, 1, %v326_v0 }
  0x7b   :  { %v122_v10 = vpop.permute.xlu2 %121 }
  0x7c   :  { %vm123_vm13 = vcmp.eq.s32.totalorder %v44_v49, %v122_v10  ;;  %vm124_vm14 = vcmp.eq.s32.totalorder %v45_v51, %v122_v10 }
  0x7d   :  { %v125_v22 = vsel %vm123_vm13, 1, %v326_v0  ;;  %v126_v23 = vsel %vm124_vm14, 1, %v326_v0 }
  0x7f   :  { %v52_v52 = vpop.permute.xlu0 %51 }
  0x80   :  { %vm54_vm1 = vcmp.eq.s32.totalorder %v45_v51, %v52_v52  ;;  %vm53_vm2 = vcmp.eq.s32.totalorder %v44_v49, %v52_v52 }
  0x81   :  { %v72_v53 = vpop.permute.xlu1 %71  ;;  %v56_v55 = vsel %vm54_vm1, 1, %v326_v0  ;;  %v55_v59 = vsel %vm53_vm2, 1, %v326_v0 }
  0x82   :  { %v58_v57 = vadd.s32 %v56_v55, %v49_v54  ;;  %vm73_vm3 = vcmp.eq.s32.totalorder %v44_v49, %v72_v53  ;;  %vm74_vm4 = vcmp.eq.s32.totalorder %v45_v51, %v72_v53 }
  0x83   :  { %v75_v2 = vsel %vm73_vm3, 1, %v326_v0  ;;  %v76_v3 = vsel %vm74_vm4, 1, %v326_v0 }
  0x88   :  { %v62_v58 = vpop.permute.xlu0 %61 }
  0x89   :  { %vm63_vm5 = vcmp.eq.s32.totalorder %v44_v49, %v62_v58  ;;  %vm64_vm6 = vcmp.eq.s32.totalorder %v45_v51, %v62_v58 }
  0x8a   :  { %v65_v60 = vsel %vm63_vm5, 1, %v326_v0  ;;  %v66_v61 = vsel %vm64_vm6, 1, %v326_v0  ;;  %v82_v62 = vpop.permute.xlu1 %81 }
  0x8b   :  { %v67_v63 = vadd.s32 %v65_v60, %v55_v59  ;;  %v68_v1 = vadd.s32 %v66_v61, %v58_v57  ;;  %vm83_vm7 = vcmp.eq.s32.totalorder %v44_v49, %v82_v62  ;;  %vm84_vm8 = vcmp.eq.s32.totalorder %v45_v51, %v82_v62 }
  0x8c   :  { %v85_v6 = vsel %vm83_vm7, 1, %v326_v0  ;;  %v86_v7 = vsel %vm84_vm8, 1, %v326_v0 }
  0x8d   :  { %v77_v4 = vadd.s32 %v75_v2, %v67_v63  ;;  %v78_v5 = vadd.s32 %v76_v3, %v68_v1 }
  0x8f   :  { %v87_v8 = vadd.s32 %v85_v6, %v77_v4  ;;  %v88_v9 = vadd.s32 %v86_v7, %v78_v5 }
  0x91   :  { %v97_v13 = vadd.s32 %v95_v11, %v87_v8  ;;  %v98_v14 = vadd.s32 %v96_v12, %v88_v9 }
  0x93   :  { %v107_v17 = vadd.s32 %v105_v15, %v97_v13  ;;  %v108_v18 = vadd.s32 %v106_v16, %v98_v14  ;;  %v112_v19 = vpop.permute.xlu1 %111 }
  0x94   :  { %vm113_vm15 = vcmp.eq.s32.totalorder %v44_v49, %v112_v19  ;;  %vm114_vm0 = vcmp.eq.s32.totalorder %v45_v51, %v112_v19 }
  0x95   :  { %v115_v20 = vsel %vm113_vm15, 1, %v326_v0  ;;  %v116_v21 = vsel %vm114_vm0, 1, %v326_v0 }
  0x96   :  { %v117_v24 = vadd.s32 %v115_v20, %v107_v17  ;;  %v118_v25 = vadd.s32 %v116_v21, %v108_v18 }
  0x98   :  { %v127_v26 = vadd.s32 %v125_v22, %v117_v24  ;;  %v128_v27 = vadd.s32 %v126_v23, %v118_v25 }
  0x9a   :  { %v129_v28 = vcvt.s32.f32 %v127_v26  ;;  %v130_v29 = vcvt.s32.f32 %v128_v27 }
  0x9c   :  { %179 = vmatmul.f32.vlgmr.msra.gmra.mxu0 %v129_v28  ;;  %199 = vmatmul.f32.vlgmr.msra.gmra.mxu1 %v130_v29 }
 0x119   :  { %v180_v30 = vpop.f32.mrf.mxu0  ;;  %v200_v31 = vpop.f32.mrf.mxu1 }
 0x11a   :  { %v201_v32 = vadd.f32 %v200_v31, %v180_v30 }
 0x11c   :  { %203 = vst [vmem:[#allocation7] sm:$0xff] %v201_v32 }
 0x11d   :  { %214 = dma.vmem_to_hbm [thread:$0]  %s210_s1, 128, %s212_s23, [#allocation4]  }
 0x11e   :  { %320 = dma.done.wait [#allocation4], 128  }
 0x11f   :  { %321 = vsyncadd [#allocation4], 4294967168 }
 0x120   :  { %219 = vsyncpa [#allocation3], 1 }
 0x121   :  { %220 = vsyncpa [#allocation6], 1 }
 0x122   :  { %221 = vsyncpa [#allocation4], 1 }

</bundles_post_ra>
